<compile_context>
chip_gen: v7x
topology: tpu7x:2x2x1
jax: 0.10.0
libtpu: 0.0.40
codegen_flags: <defaults>
</compile_context>

<pallas_src>
import math

import jax
import jax.numpy as jnp
from jax.experimental import pallas as pl
from jax.experimental.pallas import tpu as pltpu


def _round_up(n, m):
    return ((n + m - 1) // m) * m


def _round_down(n, m):
    return (n // m) * m


def _vmem_capacity_bytes():
    try:
        return int(pltpu.get_tpu_info().vmem_capacity_bytes)
    except Exception:
        return 64 * 1024 * 1024   # conservative fallback (v7x per-TC VMEM)


def highway_kernel(x_ref, w_ref, b_ref, o_ref):
    """One (row-tile, layer) grid step of the Highway recurrence.

    x_ref: (tm, H)        input rows (read only at layer 0)
    w_ref: (H, 2H)        this layer's fused [normal|gate] weight, (in, out)
           or (L, H, 2H)  whole resident weight stack
    b_ref: (1, 2H)        this layer's fused bias (f32)
    o_ref: (tm, H)        running x; resident across the layer grid axis
    """
    layer = pl.program_id(1)
    h = o_ref.shape[-1]

    if len(w_ref.shape) == 3:          # resident weight stack: index the layer
        w = w_ref[layer]
    else:                              # streamed per-layer weight
        w = w_ref[...]
    b = b_ref[...]                     # f32 (1, 2H)

    def step(x):
        # Single fused matmul: (tm, H) x (H, 2H) -> (tm, 2H), f32 accumulation.
        z = jnp.dot(x.astype(w.dtype), w,
                    preferred_element_type=jnp.float32) + b
        normal = jnp.maximum(z[:, :h], 0.0)
        gate = 0.5 * jnp.tanh(0.5 * z[:, h:]) + 0.5   # == sigmoid, one EUP op
        xf = x.astype(jnp.float32)
        o_ref[...] = (xf + gate * (normal - xf)).astype(o_ref.dtype)

    @pl.when(layer == 0)
    def _():
        step(x_ref[...])               # no store-then-reload through o_ref

    @pl.when(layer != 0)
    def _():
        step(o_ref[...])


def highway(x, wn, bn, wg, bg, *, tm=512, matmul_dtype=None):
    """Highway forward (eval mode).

    x:      (..., H)
    wn, wg: (L, H, H)  per-layer weights in torch nn.Linear (out, in) layout
    bn, bg: (L, H)     per-layer biases
    matmul_dtype: optional dtype for the MXU operands (e.g. jnp.bfloat16);
                  accumulation, gating math and the output dtype stay as-is.
    """
    # TODO(synk): dropout (training mode) is not implemented; this matches the
    # module's eval-mode forward where F.dropout is the identity.
    *lead, H = x.shape
    L, h_out, h_in = wn.shape
    assert h_out == H and h_in == H and wg.shape == wn.shape
    assert bn.shape == (L, H) and bg.shape == (L, H)

    M = 1
    for d in lead:
        M *= d
    x2d = x.reshape(M, H)

    mm_dtype = jnp.dtype(matmul_dtype) if matmul_dtype is not None else jnp.dtype(wn.dtype)

    # Fuse normal/gate into one matmul and pre-transpose once:
    # (L, 2H, H) torch (out, in)  ->  (L, H_in, 2H_out).
    w_all = jnp.swapaxes(jnp.concatenate([wn, wg], axis=1), 1, 2).astype(mm_dtype)
    b_all = jnp.concatenate([bn, bg], axis=-1).astype(jnp.float32).reshape(L, 1, 2 * H)

    x_itemsize = jnp.dtype(x.dtype).itemsize
    w_itemsize = jnp.dtype(mm_dtype).itemsize
    sublane = max(8, 32 // x_itemsize)          # 8 (f32) / 16 (bf16) / 32 (int8)

    vmem_cap = _vmem_capacity_bytes()
    budget = min(int(0.70 * vmem_cap), 96 * 1024 * 1024)

    per_layer_w_bytes = 2 * H * H * w_itemsize
    all_w_bytes = L * per_layer_w_bytes
    # Keep the whole weight stack resident (one HBM pass, constant index_map)
    # when it is small even if double-buffered; otherwise stream per layer.
    weights_resident = 2 * all_w_bytes <= min(24 * 1024 * 1024, budget // 2)
    fixed_bytes = (2 * all_w_bytes) if weights_resident else 2 * per_layer_w_bytes
    fixed_bytes += 2 * 2 * (2 * H) * 4          # double-buffered f32 fused biases

    # Per-row VMEM: double-buffered x-in and out tiles + f32 temp headroom.
    per_row_bytes = 2 * H * x_itemsize + 2 * H * x_itemsize + 4 * H * 4
    tm_budget = max(sublane, (budget - fixed_bytes) // per_row_bytes)

    tm = min(tm, int(tm_budget))
    # Megacore: ensure >= 2 row tiles when M allows (v7x has 2 TensorCores).
    if M >= 2 * sublane:
        tm = min(tm, _round_up(-(-M // 2), sublane))
    tm = min(tm, _round_up(M, sublane))
    tm = max(sublane, _round_down(tm, sublane))

    grid = (pl.cdiv(M, tm), L)

    if weights_resident:
        w_spec = pl.BlockSpec((L, H, 2 * H), lambda i, l: (0, 0, 0))
    else:
        w_spec = pl.BlockSpec((None, H, 2 * H), lambda i, l: (l, 0, 0))

    flops = 2 * M * H * (2 * H) * L + 7 * M * H * L
    bytes_accessed = (2 * M * H * x_itemsize        # x in + out (single pass)
                      + all_w_bytes                 # fused weights (single pass)
                      + L * 2 * H * 4)              # fused biases
    cost = pl.CostEstimate(flops=flops,
                           transcendentals=M * H * L,   # one tanh per elem/layer
                           bytes_accessed=bytes_accessed)

    # Generation-aware VMEM cap (v7x: ~54 MiB of its 64 MiB; v5e/v6e: <=100 MiB).
    vmem_limit = max(32 * 1024 * 1024,
                     min(int(0.85 * vmem_cap), 100 * 1024 * 1024))

    out2d = pl.pallas_call(
        highway_kernel,
        out_shape=jax.ShapeDtypeStruct((M, H), x.dtype),
        grid_spec=pltpu.PrefetchScalarGridSpec(
            num_scalar_prefetch=0,
            grid=grid,
            in_specs=[
                pl.BlockSpec((tm, H), lambda i, l: (i, 0)),              # x rows
                w_spec,                                                  # fused W
                pl.BlockSpec((None, 1, 2 * H), lambda i, l: (l, 0, 0)),  # fused b
            ],
            out_specs=pl.BlockSpec((tm, H), lambda i, l: (i, 0)),
        ),
        compiler_params=pltpu.CompilerParams(
            dimension_semantics=("parallel", "arbitrary"),
            vmem_limit_bytes=vmem_limit),
        cost_estimate=cost,
    )(x2d, w_all, b_all)

    return out2d.reshape(*lead, H)


def highway_ref(x, wn, bn, wg, bg):
    """Pure-JAX reference matching torch eval-mode semantics."""
    L = wn.shape[0]
    for layer in range(L):
        normal = jax.nn.relu(jnp.einsum("...h,oh->...o", x, wn[layer]) + bn[layer])
        gate = jax.nn.sigmoid(jnp.einsum("...h,oh->...o", x, wg[layer]) + bg[layer])
        x = gate * normal + (1.0 - gate) * x
    return x


if __name__ == "__main__":
    B, S, H, L = 2, 8, 128, 3   # in_size = H = 128, n_layers = 3

    key = jax.random.PRNGKey(0)
    kx, kwn, kbn, kwg, kbg = jax.random.split(key, 5)

    bound = 1.0 / math.sqrt(H)   # torch.nn.Linear fan-in uniform bound
    x = jax.random.normal(kx, (B, S, H), dtype=jnp.float32)
    wn = jax.random.uniform(kwn, (L, H, H), minval=-bound, maxval=bound, dtype=jnp.float32)
    bn = jax.random.uniform(kbn, (L, H), minval=-bound, maxval=bound, dtype=jnp.float32)
    wg = jax.random.uniform(kwg, (L, H, H), minval=-bound, maxval=bound, dtype=jnp.float32)
    bg = jax.random.uniform(kbg, (L, H), minval=-bound, maxval=bound, dtype=jnp.float32)

    ref = highway_ref(x, wn, bn, wg, bg)

    # Exact-dtype (f32 MXU) path.
    out = jax.block_until_ready(highway(x, wn, bn, wg, bg))
    assert out.shape == (B, S, H)
    assert jnp.allclose(out, ref, atol=1e-4, rtol=1e-4), \
        f"f32 path mismatch, max abs err {float(jnp.max(jnp.abs(out - ref)))}"

    # bf16-matmul fast path (numerics trade-off; f32 accumulation + gating).
    out_bf16 = jax.block_until_ready(highway(x, wn, bn, wg, bg, matmul_dtype=jnp.bfloat16))
    assert jnp.allclose(out_bf16, ref, atol=8e-2, rtol=8e-2), \
        f"bf16 path mismatch, max abs err {float(jnp.max(jnp.abs(out_bf16 - ref)))}"

    print("KERNEL_OK")
</pallas_src>

<mosaic_0001>
module attributes {stable_mosaic.version = 11 : i64} {
  func.func @highway_kernel(%arg0: i32, %arg1: i32, %arg2: memref<8x128xf32, #tpu.memory_space<vmem>>, %arg3: memref<3x128x256xf32, #tpu.memory_space<vmem>>, %arg4: memref<1x1x256xf32, #tpu.memory_space<vmem>>, %arg5: memref<8x128xf32, #tpu.memory_space<vmem>>) attributes {dimension_semantics = [#tpu.dimension_semantics<parallel>, #tpu.dimension_semantics<arbitrary>], iteration_bounds = array<i64: 2, 3>, scalar_prefetch = 0 : i64, scratch_operands = 0 : i64, tpu.core_type = #tpu.core_type<tc>, window_params = [{transform_indices = @transform_0, window_bounds = array<i64: 8, 128>}, {pipeline_mode = #tpu.pipeline_mode<synchronous>, transform_indices = @transform_1, window_bounds = array<i64: 3, 128, 256>}, {transform_indices = @transform_2, window_bounds = array<i64: 1, 1, 256>}, {transform_indices = @transform_3, window_bounds = array<i64: 8, 128>}]} {
    %0 = arith.index_cast %arg1 : i32 to index
    %c0 = arith.constant 0 : index
    %c0_0 = arith.constant 0 : index
    %1 = vector.load %arg3[%0, %c0, %c0_0] : memref<3x128x256xf32, #tpu.memory_space<vmem>>, vector<1x128x256xf32>
    %2 = vector.shape_cast %1 : vector<1x128x256xf32> to vector<128x256xf32>
    %c0_1 = arith.constant 0 : index
    %c0_2 = arith.constant 0 : index
    %c0_3 = arith.constant 0 : index
    %3 = vector.load %arg4[%c0_1, %c0_2, %c0_3] : memref<1x1x256xf32, #tpu.memory_space<vmem>>, vector<1x1x256xf32>
    %4 = vector.shape_cast %3 : vector<1x1x256xf32> to vector<1x256xf32>
    %c0_i32 = arith.constant 0 : i32
    %5 = arith.cmpi eq, %arg1, %c0_i32 : i32
    %6 = arith.extui %5 : i1 to i32
    %c0_i32_4 = arith.constant 0 : i32
    %7 = arith.cmpi ne, %6, %c0_i32_4 : i32
    scf.if %7 {
      %c0_7 = arith.constant 0 : index
      %c0_8 = arith.constant 0 : index
      %11 = vector.load %arg2[%c0_7, %c0_8] : memref<8x128xf32, #tpu.memory_space<vmem>>, vector<8x128xf32>
      %cst = arith.constant dense<0.000000e+00> : vector<8x256xf32>
      %12 = tpu.matmul %11, %2, %cst {dimension_numbers = #tpu.dot_dimension_numbers<[1], [0], [0], [1], [0, 0, 1, 1], [], []>} : vector<8x128xf32>, vector<128x256xf32>, vector<8x256xf32> -> vector<8x256xf32>
      %13 = vector.broadcast %4 : vector<1x256xf32> to vector<8x256xf32>
      %14 = arith.addf %12, %13 : vector<8x256xf32>
      %15 = vector.extract_strided_slice %14 {offsets = [0, 0], sizes = [8, 128], strides = [1, 1]} : vector<8x256xf32> to vector<8x128xf32>
      %cst_9 = arith.constant 0.000000e+00 : f32
      %16 = vector.broadcast %cst_9 : f32 to vector<8x128xf32>
      %17 = arith.maximumf %15, %16 : vector<8x128xf32>
      %18 = vector.extract_strided_slice %14 {offsets = [0, 128], sizes = [8, 128], strides = [1, 1]} : vector<8x256xf32> to vector<8x128xf32>
      %cst_10 = arith.constant 5.000000e-01 : f32
      %19 = vector.broadcast %cst_10 : f32 to vector<8x128xf32>
      %20 = arith.mulf %19, %18 : vector<8x128xf32>
      %21 = math.tanh %20 : vector<8x128xf32>
      %cst_11 = arith.constant 5.000000e-01 : f32
      %22 = vector.broadcast %cst_11 : f32 to vector<8x128xf32>
      %23 = arith.mulf %22, %21 : vector<8x128xf32>
      %cst_12 = arith.constant 5.000000e-01 : f32
      %24 = vector.broadcast %cst_12 : f32 to vector<8x128xf32>
      %25 = arith.addf %23, %24 : vector<8x128xf32>
      %26 = arith.subf %17, %11 : vector<8x128xf32>
      %27 = arith.mulf %25, %26 : vector<8x128xf32>
      %28 = arith.addf %11, %27 : vector<8x128xf32>
      %c0_13 = arith.constant 0 : index
      %c0_14 = arith.constant 0 : index
      %29 = vector.load %arg5[%c0_13, %c0_14] : memref<8x128xf32, #tpu.memory_space<vmem>>, vector<8x128xf32>
      tpu.vector_store %arg5[%c0_13, %c0_14], %28 {strides = array<i32>} : memref<8x128xf32, #tpu.memory_space<vmem>>, vector<8x128xf32>,
    } else {
    }
    %c0_i32_5 = arith.constant 0 : i32
    %8 = arith.cmpi ne, %arg1, %c0_i32_5 : i32
    %9 = arith.extui %8 : i1 to i32
    %c0_i32_6 = arith.constant 0 : i32
    %10 = arith.cmpi ne, %9, %c0_i32_6 : i32
    scf.if %10 {
      %c0_7 = arith.constant 0 : index
      %c0_8 = arith.constant 0 : index
      %11 = vector.load %arg5[%c0_7, %c0_8] : memref<8x128xf32, #tpu.memory_space<vmem>>, vector<8x128xf32>
      %cst = arith.constant dense<0.000000e+00> : vector<8x256xf32>
      %12 = tpu.matmul %11, %2, %cst {dimension_numbers = #tpu.dot_dimension_numbers<[1], [0], [0], [1], [0, 0, 1, 1], [], []>} : vector<8x128xf32>, vector<128x256xf32>, vector<8x256xf32> -> vector<8x256xf32>
      %13 = vector.broadcast %4 : vector<1x256xf32> to vector<8x256xf32>
      %14 = arith.addf %12, %13 : vector<8x256xf32>
      %15 = vector.extract_strided_slice %14 {offsets = [0, 0], sizes = [8, 128], strides = [1, 1]} : vector<8x256xf32> to vector<8x128xf32>
      %cst_9 = arith.constant 0.000000e+00 : f32
      %16 = vector.broadcast %cst_9 : f32 to vector<8x128xf32>
      %17 = arith.maximumf %15, %16 : vector<8x128xf32>
      %18 = vector.extract_strided_slice %14 {offsets = [0, 128], sizes = [8, 128], strides = [1, 1]} : vector<8x256xf32> to vector<8x128xf32>
      %cst_10 = arith.constant 5.000000e-01 : f32
      %19 = vector.broadcast %cst_10 : f32 to vector<8x128xf32>
      %20 = arith.mulf %19, %18 : vector<8x128xf32>
      %21 = math.tanh %20 : vector<8x128xf32>
      %cst_11 = arith.constant 5.000000e-01 : f32
      %22 = vector.broadcast %cst_11 : f32 to vector<8x128xf32>
      %23 = arith.mulf %22, %21 : vector<8x128xf32>
      %cst_12 = arith.constant 5.000000e-01 : f32
      %24 = vector.broadcast %cst_12 : f32 to vector<8x128xf32>
      %25 = arith.addf %23, %24 : vector<8x128xf32>
      %26 = arith.subf %17, %11 : vector<8x128xf32>
      %27 = arith.mulf %25, %26 : vector<8x128xf32>
      %28 = arith.addf %11, %27 : vector<8x128xf32>
      %c0_13 = arith.constant 0 : index
      %c0_14 = arith.constant 0 : index
      %29 = vector.load %arg5[%c0_13, %c0_14] : memref<8x128xf32, #tpu.memory_space<vmem>>, vector<8x128xf32>
      tpu.vector_store %arg5[%c0_13, %c0_14], %28 {strides = array<i32>} : memref<8x128xf32, #tpu.memory_space<vmem>>, vector<8x128xf32>,
    } else {
    }
    return
  }
  func.func @transform_0(%arg0: i32, %arg1: i32) -> (i32, i32) {
    %c0_i32 = arith.constant 0 : i32
    %c0_i32_0 = arith.constant 0 : i32
    return %arg0, %c0_i32 : i32, i32
  }
  func.func @transform_1(%arg0: i32, %arg1: i32) -> (i32, i32, i32) {
    %c0_i32 = arith.constant 0 : i32
    %c0_i32_0 = arith.constant 0 : i32
    %c0_i32_1 = arith.constant 0 : i32
    %c0_i32_2 = arith.constant 0 : i32
    return %c0_i32, %c0_i32_0, %c0_i32_1 : i32, i32, i32
  }
  func.func @transform_2(%arg0: i32, %arg1: i32) -> (i32, i32, i32) {
    %c0_i32 = arith.constant 0 : i32
    %c0_i32_0 = arith.constant 0 : i32
    %c0_i32_1 = arith.constant 0 : i32
    return %arg1, %c0_i32, %c0_i32_0 : i32, i32, i32
  }
  func.func @transform_3(%arg0: i32, %arg1: i32) -> (i32, i32) {
    %c0_i32 = arith.constant 0 : i32
    %c0_i32_0 = arith.constant 0 : i32
    return %arg0, %c0_i32 : i32, i32
  }
}

</mosaic_0001>

<bundles_post_ra>
// kernel: tpu_custom_call.1
= control target key start
LH: loop header
LB: loop body
LE: loop exit
PB: predicated region body
PF: predicated region fallthrough
CT: control target
= control target key end

     0   :  { %8 = vsyncpa [#allocation3], 0  ;;  %s1359_s0 = inlined_call_operand.hbm [shape: f32[16,128], index: 0, kind: input, shape index: {}]   ;;  %s1360_s1 = inlined_call_operand.hbm [shape: f32[3,128,256], index: 1, kind: input, shape index: {}]   ;;  %s1361_s2 = inlined_call_operand.vmem [shape: f32[3,1,256], index: 2, kind: input, shape index: {}]   ;;  %s1362_s3 = inlined_call_operand.hbm [shape: f32[16,128], index: 3, kind: output, shape index: {}]  }
   0x1   :  { %10 = vsyncpa [#allocation3 + $0x1], 0 }
   0x2   :  { %11 = vsyncpa [#allocation6], 0 }
   0x3   :  { %12 = vsyncpa [#allocation4], 0 }
   0x4   :  { %14 = vsyncpa [#allocation4 + $0x1], 0  ;;  %s948_s12 = smov 0   ;;  %s950_s13 = smov 0  }
   0x5   :  { %s952_s14 = smov 0   ;;  %s954_s15 = smov 0  }
   0x6   :  { %s956_s16 = smov 0   ;;  %s958_s17 = smov 0  }
   0x7   :  { %s960_s18 = smov 0   ;;  %s962_s19 = smov 0  }
   0x8 LB: > { %s577_s20 = sadd.s32 4294967295, %s919_s19   ;;  %s578_s21 = sadd.s32 4294967294, %s919_s19   ;;  %s919_s19 = sphi %s962_s19, %s20_s19   ;;  %s915_s18 = sphi %s960_s18, %s1386_s18   ;;  %s911_s17 = sphi %s958_s17, %s1385_s17   ;;  %s907_s16 = sphi %s956_s16, %s1384_s16   ;;  %s903_s15 = sphi %s954_s15, %s1383_s15   ;;  %s899_s14 = sphi %s952_s14, %s1382_s14   ;;  %s895_s13 = sphi %s950_s13, %s1381_s13   ;;  %s891_s12 = sphi %s948_s12, %s1380_s12  }
   0x9   : > { %p52_p0 = scmp.ne.s32.totalorder %s895_s13, %s891_s12  ;;  %p992_p1 = scmp.eq.s32.totalorder %s577_s20, 0 }
   0xa   : > { %p996_p2 = scmp.eq.s32.totalorder %s577_s20, 5  ;;  %p129_p3 = scmp.eq.s32.totalorder %s578_s21, 5 }
   0xb   : > { %s1367_s22 = scalar_select %p992_p1, 1, 0 }
   0xc   : > { %s1368_s23 = scalar_select %p996_p2, 1, 0 }
   0xd   : > { %p1002_p4 = por %p992_p1, %p52_p0  ;;  %p579_p5 = scmp.ge.s32.totalorder %s919_s19, 1 }
   0xe   : > { %p1007_p6 = por %p129_p3, %p52_p0  ;;  %p136_p7 = scmp.lt.s32.totalorder %s919_s19, 7 }
   0xf   : > { %s1369_s24 = scalar_select %p1002_p4, 1, 0 }
  0x10   : > { %s1370_s25 = scalar_select %p1007_p6, 1, 0 }
  0x11   : > { %p1012_p8 = pnand %p579_p5, %p136_p7  ;;  %s921_s27 = smov [#allocation5]  }
  0x12   : > { %s148_s28 = sshll.u32 %s921_s27, 4  ;;  %s759_s5 = scalar_lea.hbm %s1360_s1, 12288  ;;  %s149_s28 = int_to_ptr.vmem [resolvable:$true] %s148_s28 }
  0x13   : > { %s1371_s26 = scalar_select %p1012_p8, 1, 0 }
  0x14   : > { %p670_p9 = pneg %p1012_p8  ;;  %p760_p11 = scmp.ne.s32.totalorder %s1360_s1, %s759_s5 }
  0x15   : > { %p766_p3 = scmp.lt.u32.totalorder %s759_s5, %s1360_s1 }
  0x16   : > { %p1020_p10 = pnand %p670_p9, %p992_p1 }
  0x18   : > { %p761_p12 = pneg %p1020_p10 }
  0x1a   : > { %p762_p13 = pnand %p761_p12, %p760_p11 }
  0x1c   : > { %p763_p0 = pneg %p762_p13 }
  0x1e   : > { %p768_p5 = pnand %p766_p3, %p763_p0 }
  0x20   : > { %771 = shalt.err (!%p768_p5)
}
  0x21   : > { %s772_s10 = scalar_lea.vmem %s149_s28, 12288  ;;  %p780_p1 = scmp.lt.s32.totalorder %s149_s28, %s149_s28 }
  0x22   : > { %p773_p7 = scmp.ne.s32.totalorder %s149_s28, %s772_s10  ;;  %p781_p4 = scmp.lt.s32.totalorder %s772_s10, %s772_s10 }
  0x24   : > { %p775_p9 = pnand %p773_p7, %p761_p12  ;;  %p782_p8 = por %p781_p4, %p780_p1 }
  0x26   : > { %p776_p6 = pneg %p775_p9 }
  0x28   : > { %p783_p2 = pnand %p782_p8, %p776_p6 }
  0x2a   : > { %786 = shalt.err (!%p783_p2)
}
  0x2b   : > { %s922_s11 = smov 256   ;;  %s923_s20 = smov 16  }
  0x2c   : > { %673 = dma.hbm_to_vmem [thread:$0]  (!%p1020_p10), %s1360_s1, 12288, %s149_s28, [#allocation6], %s922_s11, %s922_s11, %s923_s20  }
  0x2d   : > { %s29_s30 = sadd.s32 1, %s911_s17  ;;  %s32_s4 = sadd.s32 1, %s915_s18 }
  0x2e   : > { %p30_p1 = scmp.ge.s32.totalorder %s29_s30, 3  ;;  %s39_s5 = sadd.s32 1, %s899_s14 }
  0x2f   : > { %p46_p2 = scmp.ne.s32.totalorder %s899_s14, %s895_s13  ;;  %p47_p4 = scmp.eq.s32.totalorder %s919_s19, 0 }
  0x30   : > { %s1388_s30 = smov (%p30_p1, %s29_s30), 0  ;;  %s1390_s4 = smov (!%p30_p1, %s32_s4), %s915_s18 }
  0x31   : > { %p1373_p6 = scmp.ne.s32.totalorder %s1368_s23, 0  ;;  %p34_p11 = scmp.ge.s32.totalorder %s1390_s4, 2 }
  0x32   : > { %p683_p10 = scmp.lt.s32.totalorder %s919_s19, 6  ;;  %p48_p12 = por %p47_p4, %p46_p2 }
  0x33   : > { %p1051_p8 = por %p1373_p6, %p46_p2  ;;  %s162_s28 = sand.u32 1, %s899_s14  }
  0x34   : > { %s1392_s4 = smov (%p34_p11, %s1390_s4), 0  ;;  %s582_s6 = sshll.u32 %s162_s28, 3 }
  0x35   : > { %s36_s7 = ssub.s32 %s915_s18, %s1392_s4  ;;  %s583_s8 = sshll.u32 %s915_s18, 7 }
  0x36   : > { %p37_p13 = scmp.eq.s32.totalorder %s36_s7, 0  ;;  %s1065_s23 = scalar_lea.hbm %s1359_s0, %s583_s8 }
  0x37   : > { %s166_s11 = scalar_lea.vmem [#allocation2], %s582_s6  ;;  %p1074_p0 = pnand %p683_p10, %p48_p12 }
  0x38   : > { %s173_s20 = sshll.u32 %s166_s11, 4  ;;  %s163_s7 = scalar_lea.sflag [#allocation3], %s162_s28  ;;  %s1070_s20 = int_to_ptr.vmem [resolvable:$true] %s173_s20 }
  0x39   : > { %s1068_s21 = scalar_select %p37_p13, %s899_s14, %s39_s5  }
  0x3a   : > { %s787_s8 = scalar_lea.hbm %s1065_s23, 128  ;;  %p789_p5 = pneg %p1074_p0 }
  0x3b   : > { %p788_p3 = scmp.ne.s32.totalorder %s1065_s23, %s787_s8  ;;  %s792_s9 = scalar_lea.hbm %s1359_s0, 256 }
  0x3c   : > { %p793_p1 = scmp.lt.u32.totalorder %s1065_s23, %s1359_s0  ;;  %p794_p2 = scmp.lt.u32.totalorder %s792_s9, %s787_s8 }
  0x3d   : > { %p790_p7 = pnand %p789_p5, %p788_p3  ;;  %p796_p6 = scmp.lt.u32.totalorder %s787_s8, %s1065_s23 }
  0x3e   : > { %p795_p4 = por %p794_p2, %p793_p1 }
  0x3f   : > { %p791_p9 = pneg %p790_p7 }
  0x40   : > { %p797_p11 = por %p796_p6, %p795_p4 }
  0x42   : > { %p798_p10 = pnand %p797_p11, %p791_p9 }
  0x44   : > { %801 = shalt.err (!%p798_p10)
}
  0x45   : > { %s802_s28 = scalar_lea.vmem %s1070_s20, 128  ;;  %s924_s5 = smov [#allocation2]  }
  0x46   : > { %p803_p12 = scmp.ne.s32.totalorder %s1070_s20, %s802_s28  ;;  %s807_s6 = sshll.u32 %s924_s5, 4  ;;  %s808_s6 = int_to_ptr.vmem [resolvable:$false] %s807_s6 }
  0x47   : > { %s809_s10 = scalar_lea.vmem %s808_s6, 256  ;;  %p810_p7 = scmp.lt.s32.totalorder %s1070_s20, %s808_s6 }
  0x48   : > { %p805_p13 = pnand %p803_p12, %p789_p5  ;;  %p811_p1 = scmp.lt.s32.totalorder %s809_s10, %s802_s28 }
  0x4a   : > { %p806_p3 = pneg %p805_p13  ;;  %p812_p2 = por %p811_p1, %p810_p7 }
  0x4c   : > { %p813_p4 = pnand %p812_p2, %p806_p3 }
  0x4e   : > { %816 = shalt.err (!%p813_p4)
}
  0x4f   : > { %677 = dma.hbm_to_vmem [thread:$0]  (!%p1074_p0), %s1065_s23, 128, %s1070_s20, %s163_s7  }
  0x50   : > { %p1376_p9 = scmp.ne.s32.totalorder %s1371_s26, 0 }
  0x51   : > { %s1106_s8 = sand.u32 (!%p1376_p9), 1, %s895_s13   ;;  %p1377_p5 = scmp.ne.s32.totalorder (!%p1376_p9), %s1369_s24, 0 }
  0x52   : > { %189 = sbr.rel (%p1376_p9) target bundleno = 664 (0x298), region = 32  ;;  %s585_s9 = sshll.u32 (!%p1376_p9), %s1106_s8, 3 }
  0x53   : > { %s192_s11 = scalar_lea.sflag (!%p1376_p9), [#allocation3], %s1106_s8  ;;  %s1112_s28 = scalar_lea.vmem (!%p1376_p9), [#allocation2], %s585_s9 }
  0x59   : > { %878 = dma.done.wait (%p1377_p5), %s192_s11, 128  }
  0x5a   : > { %880 = vsyncadd (%p1377_p5), %s192_s11, 4294967168  ;;  %p1378_p0 = scmp.ne.s32.totalorder %s1367_s22, 0 }
  0x5c   : > { %882 = dma.done.wait (%p1378_p0), [#allocation6], 12288  }
  0x5d   : > { %884 = vsyncadd (%p1378_p0), [#allocation6], 4294955008  ;;  %s597_s26 = sshll.u32 %s903_s15, 8  ;;  %p226_p6 = scmp.lt.s32.totalorder %s903_s15, 2 }
  0x5e   : > { %s1125_s20 = scalar_lea.vmem [#allocation5], %s597_s26  ;;  %s1230_s5 = scalar_lea.vmem [#allocation7], %s585_s9 }
  0x5f   : > { %s227_s23 = scalar_select %p226_p6, %s903_s15, 2  ;;  %v1128_v0 = vld [vmem:[%s1125_s20] sm:$0xff]  ;;  %v1131_v1 = vld [vmem:[%s1125_s20 + $0x8] sm:$0xff]  ;;  %v1134_v2 = vld [vmem:[%s1125_s20 + $0x10] sm:$0xff] }
  0x60   : > { %v1137_v3 = vld [vmem:[%s1125_s20 + $0x18] sm:$0xff]  ;;  %v1140_v4 = vld [vmem:[%s1125_s20 + $0x20] sm:$0xff]  ;;  %v1143_v5 = vld [vmem:[%s1125_s20 + $0x28] sm:$0xff]  ;;  %p591_p11 = scmp.ne.s32.totalorder %s903_s15, 0 }
  0x61   : > { %v1146_v6 = vld [vmem:[%s1125_s20 + $0x30] sm:$0xff]  ;;  %v1149_v7 = vld [vmem:[%s1125_s20 + $0x38] sm:$0xff]  ;;  %v1152_v8 = vld [vmem:[%s1125_s20 + $0x40] sm:$0xff]  ;;  %s588_s22 = sshll.u32 %s227_s23, 1  ;;  %v598_v33 = vpack.c.bf16 (!%p591_p11), %v1137_v3, %v1131_v1  ;;  %v600_v34 = vpack.c.bf16 (!%p591_p11), %v1134_v2, %v1128_v0  ;;  %v925_v38 = vmov (!%p591_p11), 0.0   ;;  %v272_v51 = vlaneseq (!%p591_p11) }
  0x62   : > { %v1155_v9 = vld [vmem:[%s1125_s20 + $0x48] sm:$0xff]  ;;  %v1158_v10 = vld [vmem:[%s1125_s20 + $0x50] sm:$0xff]  ;;  %v1161_v11 = vld [vmem:[%s1125_s20 + $0x58] sm:$0xff]  ;;  %s229_s7 = scalar_lea.vmem %s1361_s2, %s588_s22  ;;  %v602_v35 = vpack.c.bf16 (!%p591_p11), %v1149_v7, %v1143_v5  ;;  %v604_v36 = vpack.c.bf16 (!%p591_p11), %v1146_v6, %v1140_v4  ;;  %346 = vmatprep.mubr.f32.mxu0 (!%p591_p11), %v925_v38 }
  0x63   : > { %v1164_v12 = vld [vmem:[%s1125_s20 + $0x60] sm:$0xff]  ;;  %v1167_v13 = vld [vmem:[%s1125_s20 + $0x68] sm:$0xff]  ;;  %v1170_v14 = vld [vmem:[%s1125_s20 + $0x70] sm:$0xff]  ;;  %269 = sbr.rel (%p591_p11) target bundleno = 368 (0x170), region = 44  ;;  %599 = vmatprep.subr.bf16.mxu0 (!%p591_p11), %v598_v33  ;;  %v606_v37 = vpack.c.bf16 (!%p591_p11), %v1161_v11, %v1155_v9  ;;  %v608_v39 = vpack.c.bf16 (!%p591_p11), %v1158_v10, %v1152_v8  ;;  %v273_v52 = vshrl.u32 (!%p591_p11), %v272_v51, 7 }
  0x64   : > { %v1173_v15 = vld [vmem:[%s1125_s20 + $0x78] sm:$0xff]  ;;  %v1176_v16 = vld [vmem:[%s1125_s20 + $0x80] sm:$0xff]  ;;  %v1179_v17 = vld [vmem:[%s1125_s20 + $0x88] sm:$0xff]  ;;  %601 = vmatpush1.bf16.msra.mxu0 (!%p591_p11), %v600_v34  ;;  %v612_v41 = vpack.c.bf16 (!%p591_p11), %v1170_v14, %v1164_v12 }
  0x65   : > { %v1182_v18 = vld [vmem:[%s1125_s20 + $0x90] sm:$0xff]  ;;  %v1185_v19 = vld [vmem:[%s1125_s20 + $0x98] sm:$0xff]  ;;  %v1188_v20 = vld [vmem:[%s1125_s20 + $0xa0] sm:$0xff]  ;;  %603 = vmatprep.subr.bf16.mxu0 (!%p591_p11), %v602_v35  ;;  %v610_v40 = vpack.c.bf16 (!%p591_p11), %v1173_v15, %v1167_v13  ;;  %v278_v53 = vsub.s32 (!%p591_p11), 1, %v273_v52  ;;  %v274_v58 = vsub.s32 (!%p591_p11), 0, %v273_v52 }
  0x66   : > { %v1194_v21 = vld [vmem:[%s1125_s20 + $0xa8] sm:$0xff]  ;;  %v1197_v22 = vld [vmem:[%s1125_s20 + $0xb0] sm:$0xff]  ;;  %v1200_v23 = vld [vmem:[%s1125_s20 + $0xb8] sm:$0xff]  ;;  %v614_v42 = vpack.c.bf16 (!%p591_p11), %v1185_v19, %v1179_v17  ;;  %v616_v43 = vpack.c.bf16 (!%p591_p11), %v1182_v18, %v1176_v16 }
  0x67   : > { %v1203_v24 = vld [vmem:[%s1125_s20 + $0xc0] sm:$0xff]  ;;  %v1206_v25 = vld [vmem:[%s1125_s20 + $0xc8] sm:$0xff]  ;;  %v1209_v26 = vld [vmem:[%s1125_s20 + $0xd0] sm:$0xff]  ;;  %v618_v44 = vpack.c.bf16 (!%p591_p11), %v1200_v23, %v1194_v21  ;;  %v620_v45 = vpack.c.bf16 (!%p591_p11), %v1197_v22, %v1188_v20 }
  0x68   : > { %v1212_v27 = vld [vmem:[%s1125_s20 + $0xd8] sm:$0xff]  ;;  %v1215_v28 = vld [vmem:[%s1125_s20 + $0xe0] sm:$0xff]  ;;  %v1218_v29 = vld [vmem:[%s1125_s20 + $0xe8] sm:$0xff]  ;;  %605 = vmatpush1.bf16.msra.mxu0 (!%p591_p11), %v604_v36  ;;  %v624_v47 = vpack.c.bf16 (!%p591_p11), %v1209_v26, %v1203_v24 }
  0x69   : > { %v1221_v30 = vld [vmem:[%s1125_s20 + $0xf0] sm:$0xff]  ;;  %v1224_v31 = vld [vmem:[%s1125_s20 + $0xf8] sm:$0xff]  ;;  %v1226_v32 = vld [vmem:[%s229_s7] sm:$0x3]  ;;  %607 = vmatprep.subr.bf16.mxu0 (!%p591_p11), %v606_v37  ;;  %v622_v46 = vpack.c.bf16 (!%p591_p11), %v1212_v27, %v1206_v25 }
  0x6a   : > { %v626_v48 = vpack.c.bf16 %v1224_v31, %v1218_v29  ;;  %v628_v49 = vpack.c.bf16 %v1221_v30, %v1215_v28  ;;  %v270_v50 = vld [vmem:[%s1112_s28] sm:$0xff]  ;;  %v279_v54 = vrot.slane %v1226_v32, %v278_v53  ;;  %v275_v60 = vrot.slane %v1226_v32, %v274_v58 }
  0x6c   : > { %609 = vmatpush1.bf16.msra.mxu0 %v608_v39 }
  0x6d   : > { %611 = vmatprep.subr.bf16.mxu0 %v610_v40 }
  0x70   : > { %613 = vmatpush1.bf16.msra.mxu0 %v612_v41 }
  0x71   : > { %615 = vmatprep.subr.bf16.mxu0 %v614_v42 }
  0x74   : > { %617 = vmatpush1.bf16.msra.mxu0 %v616_v43 }
  0x75   : > { %619 = vmatprep.subr.bf16.mxu0 %v618_v44 }
  0x78   : > { %621 = vmatpush1.bf16.msra.mxu0 %v620_v45 }
  0x79   : > { %623 = vmatprep.subr.bf16.mxu0 %v622_v46 }
  0x7c   : > { %625 = vmatpush1.bf16.msra.mxu0 %v624_v47 }
  0x7d   : > { %627 = vmatprep.subr.bf16.mxu0 %v626_v48 }
  0x80   : > { %629 = vmatpush1.bf16.msra.mxu0 %v628_v49 }
  0x83   : > { %347 = vmatmul.mubr.f32.vlgmr.msra.gmra.mrb[0].mxu0 %v270_v50 }
 0x156   : > { %v348_v55 = vpop.f32.mrb[0].mxu0 }
 0x157   : > { %v350_v56 = vpop.f32.mrb[1].mxu0  ;;  %v349_v61 = vadd.f32 %v348_v55, %v275_v60 }
 0x158   : > { %v351_v57 = vadd.f32 %v350_v56, %v279_v54 }
 0x159   : > { %v353_v62 = vmax.f32 %v349_v61, 0.0 }
 0x15a   : > { %v354_v59 = vmul.f32 0.5, %v351_v57 }
 0x15b   : > { %v358_v34 = vsub.f32 %v353_v62, %v270_v50 }
 0x15c   : > { %755 = vtanh.f32 %v354_v59 }
 0x166   : > { %v756_v63 = vpop.eup %755 }
 0x167   : > { %v356_v33 = vmul.f32 0.5, %v756_v63 }
 0x169   : > { %v357_v35 = vadd.f32 0.5, %v356_v33 }
 0x16b   : > { %v359_v36 = vmul.f32 %v358_v34, %v357_v35 }
 0x16d   : > { %v360_v37 = vadd.f32 %v359_v36, %v270_v50 }
 0x16f   : > { %361 = vst [vmem:[%s1230_s5] sm:$0xff] %v360_v37 }
 0x170 PF: > { %p592_p10 = scmp.eq.s32.totalorder %s903_s15, 0 }
 0x171   : > { %v630_v38 = vpack.c.bf16 (!%p592_p10), %v1137_v3, %v1131_v1  ;;  %v632_v39 = vpack.c.bf16 (!%p592_p10), %v1134_v2, %v1128_v0  ;;  %v634_v40 = vpack.c.bf16 (!%p592_p10), %v1149_v7, %v1143_v5  ;;  %v636_v41 = vpack.c.bf16 (!%p592_p10), %v1146_v6, %v1140_v4 }
 0x172   : > { %365 = sbr.rel (%p592_p10) target bundleno = 640 (0x280), region = 48  ;;  %v638_v42 = vpack.c.bf16 (!%p592_p10), %v1161_v11, %v1155_v9  ;;  %v926_v43 = vmov (!%p592_p10), 0.0   ;;  %v640_v1 = vpack.c.bf16 (!%p592_p10), %v1158_v10, %v1152_v8  ;;  %v642_v0 = vpack.c.bf16 (!%p592_p10), %v1173_v15, %v1167_v13 }
 0x173   : > { %631 = vmatprep.subr.bf16.mxu0 (!%p592_p10), %v630_v38  ;;  %442 = vmatprep.mubr.f32.mxu0 (!%p592_p10), %v926_v43  ;;  %v644_v2 = vpack.c.bf16 (!%p592_p10), %v1170_v14, %v1164_v12  ;;  %v646_v3 = vpack.c.bf16 (!%p592_p10), %v1185_v19, %v1179_v17  ;;  %v648_v4 = vpack.c.bf16 (!%p592_p10), %v1182_v18, %v1176_v16  ;;  %v368_v12 = vlaneseq (!%p592_p10) }
 0x174   : > { %633 = vmatpush1.bf16.msra.mxu0 (!%p592_p10), %v632_v39  ;;  %v650_v5 = vpack.c.bf16 (!%p592_p10), %v1200_v23, %v1194_v21  ;;  %v652_v6 = vpack.c.bf16 (!%p592_p10), %v1197_v22, %v1188_v20  ;;  %v654_v7 = vpack.c.bf16 (!%p592_p10), %v1212_v27, %v1206_v25  ;;  %v656_v8 = vpack.c.bf16 (!%p592_p10), %v1209_v26, %v1203_v24 }
 0x175   : > { %635 = vmatprep.subr.bf16.mxu0 (!%p592_p10), %v634_v40  ;;  %v658_v9 = vpack.c.bf16 (!%p592_p10), %v1224_v31, %v1218_v29  ;;  %v660_v10 = vpack.c.bf16 (!%p592_p10), %v1221_v30, %v1215_v28  ;;  %v369_v13 = vshrl.u32 (!%p592_p10), %v368_v12, 7 }
 0x176   : > { %v366_v11 = vld [vmem:[%s1230_s5] sm:$0xff] (!%p592_p10) }
 0x177   : > { %v374_v14 = vsub.s32 (!%p592_p10), 1, %v369_v13  ;;  %v370_v19 = vsub.s32 (!%p592_p10), 0, %v369_v13 }
 0x178   : > { %637 = vmatpush1.bf16.msra.mxu0 (!%p592_p10), %v636_v41 }
 0x179   : > { %639 = vmatprep.subr.bf16.mxu0 %v638_v42  ;;  %v375_v15 = vrot.slane %v1226_v32, %v374_v14  ;;  %v371_v21 = vrot.slane %v1226_v32, %v370_v19 }
 0x17c   : > { %641 = vmatpush1.bf16.msra.mxu0 %v640_v1 }
 0x17d   : > { %643 = vmatprep.subr.bf16.mxu0 %v642_v0 }
 0x180   : > { %645 = vmatpush1.bf16.msra.mxu0 %v644_v2 }
 0x181   : > { %647 = vmatprep.subr.bf16.mxu0 %v646_v3 }
 0x184   : > { %649 = vmatpush1.bf16.msra.mxu0 %v648_v4 }
 0x185   : > { %651 = vmatprep.subr.bf16.mxu0 %v650_v5 }
 0x188   : > { %653 = vmatpush1.bf16.msra.mxu0 %v652_v6 }
 0x189   : > { %655 = vmatprep.subr.bf16.mxu0 %v654_v7 }
 0x18c   : > { %657 = vmatpush1.bf16.msra.mxu0 %v656_v8 }
 0x18d   : > { %659 = vmatprep.subr.bf16.mxu0 %v658_v9 }
 0x190   : > { %661 = vmatpush1.bf16.msra.mxu0 %v660_v10 }
 0x193   : > { %443 = vmatmul.mubr.f32.vlgmr.msra.gmra.mrb[0].mxu0 %v366_v11 }
 0x266   : > { %v444_v16 = vpop.f32.mrb[0].mxu0 }
 0x267   : > { %v446_v17 = vpop.f32.mrb[1].mxu0  ;;  %v445_v22 = vadd.f32 %v444_v16, %v371_v21 }
 0x268   : > { %v447_v18 = vadd.f32 %v446_v17, %v375_v15 }
 0x269   : > { %v449_v23 = vmax.f32 %v445_v22, 0.0 }
 0x26a   : > { %v450_v20 = vmul.f32 0.5, %v447_v18 }
 0x26b   : > { %v454_v26 = vsub.f32 %v449_v23, %v366_v11 }
 0x26c   : > { %757 = vtanh.f32 %v450_v20 }
 0x276   : > { %v758_v24 = vpop.eup %757 }
 0x277   : > { %v452_v25 = vmul.f32 0.5, %v758_v24 }
 0x279   : > { %v453_v27 = vadd.f32 0.5, %v452_v25 }
 0x27b   : > { %v455_v28 = vmul.f32 %v454_v26, %v453_v27 }
 0x27d   : > { %v456_v29 = vadd.f32 %v455_v28, %v366_v11 }
 0x27f   : > { %457 = vst [vmem:[%s1230_s5] sm:$0xff] %v456_v29 }
 0x280 PF: > { %s594_s15 = sshll.u32 %s907_s16, 7  ;;  %s472_s11 = sshll.u32 %s1230_s5, 4  ;;  %s473_s11 = int_to_ptr.vmem [resolvable:$true] %s472_s11 }
 0x281   : > { %s1310_s9 = scalar_lea.hbm %s1362_s3, %s594_s15  ;;  %s459_s28 = scalar_lea.sflag [#allocation4], %s1106_s8 }
 0x282   : > { %s817_s26 = scalar_lea.vmem %s473_s11, 128  ;;  %s927_s23 = smov [#allocation7]  }
 0x283   : > { %p818_p12 = scmp.ne.s32.totalorder %s473_s11, %s817_s26  ;;  %s821_s20 = sshll.u32 %s927_s23, 4  ;;  %s822_s20 = int_to_ptr.vmem [resolvable:$false] %s821_s20 }
 0x284   : > { %s823_s22 = scalar_lea.vmem %s822_s20, 256  ;;  %p824_p7 = scmp.lt.s32.totalorder %s473_s11, %s822_s20 }
 0x285   : > { %p819_p13 = pnand %p818_p12, %p1051_p8  ;;  %p825_p1 = scmp.lt.s32.totalorder %s823_s22, %s817_s26 }
 0x287   : > { %p820_p3 = pneg %p819_p13  ;;  %p826_p2 = por %p825_p1, %p824_p7 }
 0x289   : > { %p827_p4 = pnand %p826_p2, %p820_p3 }
 0x28b   : > { %830 = shalt.err (!%p827_p4)
}
 0x28c   : > { %s831_s16 = scalar_lea.hbm %s1310_s9, 128  ;;  %s835_s27 = scalar_lea.hbm %s1362_s3, 256 }
 0x28d   : > { %p832_p9 = scmp.ne.s32.totalorder %s1310_s9, %s831_s16  ;;  %p836_p6 = scmp.lt.u32.totalorder %s1310_s9, %s1362_s3 }
 0x28e   : > { %p837_p11 = scmp.lt.u32.totalorder %s835_s27, %s831_s16  ;;  %p839_p12 = scmp.lt.u32.totalorder %s831_s16, %s1310_s9 }
 0x28f   : > { %p833_p5 = pnand %p832_p9, %p1051_p8 }
 0x290   : > { %p838_p10 = por %p837_p11, %p836_p6 }
 0x291   : > { %p834_p0 = pneg %p833_p5 }
 0x292   : > { %p840_p13 = por %p839_p12, %p838_p10 }
 0x294   : > { %p841_p3 = pnand %p840_p13, %p834_p0 }
 0x296   : > { %844 = shalt.err (!%p841_p3)
}
 0x297   : > { %668 = dma.vmem_to_hbm [thread:$0]  (%p1051_p8), %s473_s11, 128, %s1310_s9, %s459_s28  }
 0x298 PF: > { %p685_p7 = scmp.ge.s32.totalorder %s919_s19, 2  ;;  %s484_s15 = sand.u32 1, %s891_s12  }
 0x299   : > { %p1379_p1 = scmp.ne.s32.totalorder %s1370_s25, 0  ;;  %s485_s6 = scalar_lea.sflag [#allocation4], %s484_s15 }
 0x29b   : > { %p679_p2 = pnand %p685_p7, %p1379_p1 }
 0x29d   : > { %886 = dma.done.wait (!%p679_p2), %s485_s6, 128  }
 0x29e   : > { %888 = vsyncadd (!%p679_p2), %s485_s6, 4294967168  ;;  %s20_s19 = sadd.s32 1, %s919_s19   ;;  %s1380_s12 = smov %s895_s13 }
 0x29f   : > { %p17_p4 = scmp.ge.s32.totalorder %s20_s19, 8   ;;  %s1381_s13 = smov %s899_s14 }
 0x2a0   : > { %s1382_s14 = smov %s1068_s21  ;;  %s1383_s15 = smov %s911_s17 }
 0x2a1   : > { %s1384_s16 = smov %s915_s18  ;;  %s1385_s17 = smov %s1388_s30 }
 0x2a2   : > { %s1386_s18 = smov %s1392_s4  ;;  %19 = sbr.rel (!%p17_p4) target bundleno = 8 (0x8), region = 93 }
 0x2a9   :  { %490 = vsyncpa [#allocation3], 1 }
 0x2aa   :  { %492 = vsyncpa [#allocation3 + $0x1], 1 }
 0x2ab   :  { %493 = vsyncpa [#allocation6], 1 }
 0x2ac   :  { %494 = vsyncpa [#allocation4], 1 }
 0x2ad   :  { %496 = vsyncpa [#allocation4 + $0x1], 1 }

</bundles_post_ra>
